<compile_context>
chip_gen: v6e
topology: v6e:2x2x1
jax: 0.10.0
libtpu: 0.0.40
codegen_flags: <defaults>
</compile_context>

<pallas_src>
import functools

import jax
import jax.numpy as jnp
from jax import lax
from jax.experimental import pallas as pl
from jax.experimental.pallas import tpu as pltpu


# ----------------------------- Pallas kernel ------------------------------ #
def _conv_tap_acc_kernel(x_ref, w_ref, b_ref, o_ref, *, kh, kw, stride, wq,
                         tile_flat):
    """One (batch, row-tile) step of the convolution.

    x_ref : (1, 1, S*S, Cin_p, (TH + halo) * Wq)  bf16
        Halo-overlapped row tile of the phase-split, spatially flattened,
        reflection-padded input.  Tap (i, j) is the static contiguous lane
        slice starting at (i//S)*Wq + (j//S) of phase plane (i%S)*S + (j%S).
    w_ref : (K*K, Cout, Cin_p) bf16   per-tap weight matrices
    b_ref : (Cout, 1)          f32
    o_ref : (1, Cout, TH*Wq)          output tile (cols >= Wout trimmed outside)

    Per the perf review the taps are NOT concatenated into a fused RHS (that
    materialized a K*K-times-the-tile-bytes bf16 buffer in VMEM every step and
    made the store slot the binding unit).  Each tap feeds its own MXU dot and
    the f32 partials stay in vregs.
    """
    acc = None
    tap = 0
    for i in range(kh):
        for j in range(kw):
            plane = (i % stride) * stride + (j % stride)
            off = (i // stride) * wq + (j // stride)          # static offset
            xs = x_ref[0, 0, plane, :, pl.ds(off, tile_flat)]   # (Cin_p, TF)
            ws = w_ref[tap]                                     # (Cout, Cin_p)
            # Keep w as the LHS: output stays (Cout, TH*Wq) -> lane-dense,
            # unmasked stores.  Flip orientation only if a bundle dump shows
            # the MXU (not HBM / store path) as the exposed slot.
            part = jnp.dot(ws, xs, preferred_element_type=jnp.float32)
            acc = part if acc is None else acc + part
            tap += 1
    o_ref[0] = (acc + b_ref[...]).astype(o_ref.dtype)


# ------------------------------ JAX wrapper -------------------------------- #
def _spectral_normalize(weight, u, eps=1e-12):
    """One power-iteration step (PyTorch spectral_norm training-mode forward).

    Returns (normalized_weight, updated_u) so the caller can persist u.
    """
    cout = weight.shape[0]
    w_mat = weight.reshape(cout, -1)
    v = w_mat.T @ u
    v = v / (jnp.linalg.norm(v) + eps)
    wv = w_mat @ v
    u_new = wv / (jnp.linalg.norm(wv) + eps)
    sigma = jnp.dot(u_new, wv)
    return weight / sigma, u_new


def _reflect_index(pos, pad, n):
    """Map padded coordinates to ReflectionPad2d source indices.

    Valid padded coords (< n + 2*pad) reflect exactly like PyTorch's
    ReflectionPad2d; coords beyond that (alignment / halo padding) are
    clamped — they only ever feed garbage output columns or zero weights.
    """
    k = jnp.abs(pos - pad)
    k = jnp.where(k > n - 1, 2 * (n - 1) - k, k)
    return jnp.clip(k, 0, n - 1)


def _vmem_footprint_bytes(th, *, wq, halo, ss, cin_p, kk, cout, out_itemsize):
    """Honest per-step VMEM footprint (double-buffered in/out + weights + acc)."""
    tile_flat = th * wq
    in_block = ss * cin_p * (th + halo) * wq * 2           # bf16 input block
    out_block = cout * tile_flat * out_itemsize            # output block
    w_bytes = kk * cout * cin_p * 2                        # bf16 weights
    acc_bytes = cout * tile_flat * 4                       # f32 accumulator
    return 2 * in_block + 2 * out_block + 2 * w_bytes + acc_bytes + cout * 4


def _choose_row_tile(hout, *, budget_bytes, min_row_tiles, **fp_kwargs):
    """Largest divisor TH of hout whose true VMEM footprint fits the budget
    and whose flattened tile width TH*Wq is lane-dense (multiple of 128), or
    the full image.  Prefers >= min_row_tiles row tiles (so both v7x
    TensorCores get work when the batch is 1)."""
    wq = fp_kwargs["wq"]
    valid = []
    for th in range(hout, 0, -1):
        if hout % th:
            continue
        ht = hout // th
        lane_ok = ((th * wq) % 128 == 0) or (ht == 1)
        if lane_ok and _vmem_footprint_bytes(th, **fp_kwargs) <= budget_bytes:
            valid.append(th)
    if not valid:
        return hout                      # single-tile fallback for odd shapes
    for th in valid:                     # descending
        if hout // th >= min_row_tiles:
            return th
    return valid[0]


def conv_layer_forward(x, weight, bias, u, *, stride, padding=None,
                       out_dtype=None, tile_budget_bytes=24 * 1024 * 1024,
                       return_new_u=False):
    """Forward of ConvLayer: ReflectionPad2d(padding) -> spectral_norm Conv2d.

    Activations/weights are computed in bf16 on the MXU with f32 accumulation
    (the layer is HBM-bandwidth bound); spectral norm and bias stay f32.
    """
    cout, cin, kh, kw = weight.shape
    if padding is None:
        padding = kh // 2
    s = int(stride)
    assert s >= 1
    n, _, h, w_in = x.shape

    w_sn, u_new = _spectral_normalize(weight, u)

    hp, wp = h + 2 * padding, w_in + 2 * padding
    hout = (hp - kh) // s + 1
    wout = (wp - kw) // s + 1
    kk = kh * kw
    ss = s * s

    out_dtype = x.dtype if out_dtype is None else out_dtype
    out_itemsize = jnp.dtype(out_dtype).itemsize

    # Per-phase padded row width: 128-aligned for large images (aligned tap
    # loads / unmasked stores), 8-aligned for small ones (less garbage).
    wq0 = -(-wp // s)
    wq = ((wq0 + 127) // 128) * 128 if wq0 >= 512 else ((wq0 + 7) // 8) * 8
    dh, dw = (kh - 1) // s, (kw - 1) // s
    halo = dh + (1 if dw > 0 else 0)     # extra rows so each tap is one slice
    cin_p = ((cin + 7) // 8) * 8         # sublane-aligned channel count

    th = _choose_row_tile(
        hout, budget_bytes=tile_budget_bytes,
        min_row_tiles=2 if n == 1 else 1,
        wq=wq, halo=halo, ss=ss, cin_p=cin_p, kk=kk, cout=cout,
        out_itemsize=out_itemsize)
    ht = hout // th
    tile_flat = th * wq

    # ---- Build the kernel input with a single gather (one HBM pass). ------
    # tiles[b, t, pi*s + pj, c, r, w] =
    #   reflect_pad(x)[b, clamp(c), (t*TH + r)*s + pi, w*s + pj]
    # Reflect padding, channel padding, stride phase split, halo overlap and
    # width alignment are all folded into the index vectors of one gather
    # (the old pad -> reshape/transpose -> pad -> stack chain read and wrote
    # the input ~3-4x in HBM before the kernel ever ran).
    xb = x.astype(jnp.bfloat16)
    plane_pi = jnp.arange(ss, dtype=jnp.int32) // s
    plane_pj = jnp.arange(ss, dtype=jnp.int32) % s
    prow = ((jnp.arange(ht, dtype=jnp.int32)[:, None, None] * th
             + jnp.arange(th + halo, dtype=jnp.int32)[None, None, :]) * s
            + plane_pi[None, :, None])                       # (HT, SS, TH+halo)
    pcol = (jnp.arange(wq, dtype=jnp.int32)[None, :] * s
            + plane_pj[:, None])                             # (SS, Wq)
    row_src = _reflect_index(prow, padding, h)
    col_src = _reflect_index(pcol, padding, w_in)
    ch_src = jnp.minimum(jnp.arange(cin_p, dtype=jnp.int32), cin - 1)

    tiles = xb[:, ch_src[None, None, :, None, None],
               row_src[:, :, None, :, None],
               col_src[None, :, None, None, :]]
    # (N, HT, SS, Cin_p, TH+halo, Wq) -> flatten the spatial dims (contiguous).
    tiles = tiles.reshape(n, ht, ss, cin_p, (th + halo) * wq)

    # Per-tap weight matrices (K*K, Cout, Cin_p) bf16 and f32 bias.
    w_p = jnp.pad(w_sn, ((0, 0), (0, cin_p - cin), (0, 0), (0, 0)))
    w2 = (w_p.transpose(2, 3, 0, 1).reshape(kk, cout, cin_p)
          .astype(jnp.bfloat16))
    b2 = bias.reshape(cout, 1).astype(jnp.float32)

    kernel = functools.partial(_conv_tap_acc_kernel, kh=kh, kw=kw, stride=s,
                               wq=wq, tile_flat=tile_flat)

    footprint = _vmem_footprint_bytes(
        th, wq=wq, halo=halo, ss=ss, cin_p=cin_p, kk=kk, cout=cout,
        out_itemsize=out_itemsize)
    # Explicit scoped-VMEM limit matching the budgeted footprint; capped so it
    # is always valid on v7x (64 MiB physical VMEM).
    vmem_limit = int(min(max(2 * footprint, 32 * 1024 * 1024),
                         64 * 1024 * 1024))

    out_flat = pl.pallas_call(
        kernel,
        out_shape=jax.ShapeDtypeStruct((n, cout, hout * wq), out_dtype),
        grid_spec=pltpu.PrefetchScalarGridSpec(
            num_scalar_prefetch=0,
            grid=(n, ht),
            in_specs=[
                pl.BlockSpec((1, 1, ss, cin_p, (th + halo) * wq),
                             lambda b, t: (b, t, 0, 0, 0)),
                pl.BlockSpec((kk, cout, cin_p), lambda b, t: (0, 0, 0)),
                pl.BlockSpec((cout, 1), lambda b, t: (0, 0)),
            ],
            out_specs=pl.BlockSpec((1, cout, tile_flat),
                                   lambda b, t: (b, 0, t)),
        ),
        compiler_params=pltpu.CompilerParams(
            dimension_semantics=("parallel", "parallel"),
            vmem_limit_bytes=vmem_limit),
    )(tiles, w2, b2)

    # Drop the padded-width "garbage" columns (cols >= Wout) and restore NCHW.
    # The reshape is free; the slice fuses with the consumer inside a larger
    # jit.  # TODO(synk): emit Wq == Wout directly when Wout is lane-friendly.
    out = out_flat.reshape(n, cout, hout, wq)[:, :, :, :wout]
    if return_new_u:
        return out, u_new
    return out


# --------------------------- pure-JAX reference ----------------------------- #
def _reference(x, weight, bias, u, *, stride, padding=None, cast_bf16=True):
    cout, cin, kh, kw = weight.shape
    if padding is None:
        padding = kh // 2
    w_sn, _ = _spectral_normalize(weight, u)
    xp = jnp.pad(x, ((0, 0), (0, 0), (padding, padding), (padding, padding)),
                 mode="reflect")
    if cast_bf16:
        xp = xp.astype(jnp.bfloat16)
        w_sn = w_sn.astype(jnp.bfloat16)
    out = lax.conv_general_dilated(
        xp, w_sn,
        window_strides=(stride, stride),
        padding="VALID",
        dimension_numbers=("NCHW", "OIHW", "NCHW"),
        preferred_element_type=jnp.float32,
    )
    return out + bias.reshape(1, cout, 1, 1)


# ---------------------------------- main ------------------------------------ #
if __name__ == "__main__":
    def _run_case(name, n, cin, cout, k, stride, h, w, out_dtype=None,
                  tol=2e-2):
        key = jax.random.PRNGKey(0)
        kx, kw_, kb, ku = jax.random.split(key, 4)
        x = jax.random.normal(kx, (n, cin, h, w), dtype=jnp.float32)
        weight = jax.random.normal(kw_, (cout, cin, k, k), jnp.float32) * 0.1
        bias = jax.random.normal(kb, (cout,), dtype=jnp.float32) * 0.1
        # spectral_norm's power-iteration vector u (PyTorch buffer), normalized.
        u0 = jax.random.normal(ku, (cout,), dtype=jnp.float32)
        u0 = u0 / (jnp.linalg.norm(u0) + 1e-12)

        fwd = jax.jit(functools.partial(conv_layer_forward, stride=stride,
                                        out_dtype=out_dtype))
        out = jax.block_until_ready(fwd(x, weight, bias, u0))

        # Reference with the same bf16 casts (checks the kernel itself) ...
        ref = _reference(x, weight, bias, u0, stride=stride, cast_bf16=True)
        assert out.shape == ref.shape, (name, out.shape, ref.shape)
        err = float(jnp.max(jnp.abs(out.astype(jnp.float32) - ref)))
        assert err < tol, (name, err)
        # ... and against the f32 forward (checks bf16 quantization impact).
        ref32 = _reference(x, weight, bias, u0, stride=stride, cast_bf16=False)
        err32 = float(jnp.max(jnp.abs(out.astype(jnp.float32) - ref32)))
        assert err32 < 1.5e-1, (name, err32)

    # ConvLayer(in_channels=4, out_channels=8, kernel_size=3, stride=1)
    _run_case("stride1_f32out", 2, 4, 8, 3, 1, 16, 16)
    # stride=2 / odd spatial size / non-multiple-of-8 channels path.
    _run_case("stride2_f32out", 1, 3, 8, 3, 2, 17, 17)
    # bf16 output path (halves output HBM traffic); looser tolerance.
    _run_case("stride1_bf16out", 2, 4, 8, 3, 1, 16, 16,
              out_dtype=jnp.bfloat16, tol=5e-2)

    print("KERNEL_OK")
</pallas_src>

<mosaic_0001>
module attributes {stable_mosaic.version = 11 : i64} {
  func.func @_conv_tap_acc_kernel(%arg0: i32, %arg1: i32, %arg2: memref<1x1x1x8x456xbf16, #tpu.memory_space<vmem>>, %arg3: memref<9x8x8xbf16, #tpu.memory_space<vmem>>, %arg4: memref<8x1xf32, #tpu.memory_space<vmem>>, %arg5: memref<1x8x384xf32, #tpu.memory_space<vmem>>) attributes {dimension_semantics = [#tpu.dimension_semantics<parallel>, #tpu.dimension_semantics<parallel>], iteration_bounds = array<i64: 2, 1>, scalar_prefetch = 0 : i64, scratch_operands = 0 : i64, tpu.core_type = #tpu.core_type<tc>, window_params = [{transform_indices = @transform_0, window_bounds = array<i64: 1, 1, 1, 8, 456>}, {pipeline_mode = #tpu.pipeline_mode<synchronous>, transform_indices = @transform_1, window_bounds = array<i64: 9, 8, 8>}, {pipeline_mode = #tpu.pipeline_mode<synchronous>, transform_indices = @transform_2, window_bounds = array<i64: 8, 1>}, {transform_indices = @transform_3, window_bounds = array<i64: 1, 8, 384>}]} {
    %c0 = arith.constant 0 : index
    %c0_0 = arith.constant 0 : index
    %c0_1 = arith.constant 0 : index
    %c0_2 = arith.constant 0 : index
    %c0_3 = arith.constant 0 : index
    %0 = vector.load %arg2[%c0, %c0_0, %c0_1, %c0_2, %c0_3] : memref<1x1x1x8x456xbf16, #tpu.memory_space<vmem>>, vector<1x1x1x8x384xbf16>
    %1 = vector.shape_cast %0 : vector<1x1x1x8x384xbf16> to vector<8x384xbf16>
    %c0_4 = arith.constant 0 : index
    %c0_5 = arith.constant 0 : index
    %c0_6 = arith.constant 0 : index
    %2 = vector.load %arg3[%c0_4, %c0_5, %c0_6] : memref<9x8x8xbf16, #tpu.memory_space<vmem>>, vector<1x8x8xbf16>
    %3 = vector.shape_cast %2 : vector<1x8x8xbf16> to vector<8x8xbf16>
    %cst = arith.constant dense<0.000000e+00> : vector<8x384xf32>
    %4 = tpu.matmul %3, %1, %cst {dimension_numbers = #tpu.dot_dimension_numbers<[1], [0], [0], [1], [0, 0, 1, 1], [], []>} : vector<8x8xbf16>, vector<8x384xbf16>, vector<8x384xf32> -> vector<8x384xf32>
    %c0_7 = arith.constant 0 : index
    %c0_8 = arith.constant 0 : index
    %c0_9 = arith.constant 0 : index
    %c0_10 = arith.constant 0 : index
    %c1 = arith.constant 1 : index
    %5 = vector.load %arg2[%c0_7, %c0_8, %c0_9, %c0_10, %c1] : memref<1x1x1x8x456xbf16, #tpu.memory_space<vmem>>, vector<1x1x1x8x384xbf16>
    %6 = vector.shape_cast %5 : vector<1x1x1x8x384xbf16> to vector<8x384xbf16>
    %c1_11 = arith.constant 1 : index
    %c0_12 = arith.constant 0 : index
    %c0_13 = arith.constant 0 : index
    %7 = vector.load %arg3[%c1_11, %c0_12, %c0_13] : memref<9x8x8xbf16, #tpu.memory_space<vmem>>, vector<1x8x8xbf16>
    %8 = vector.shape_cast %7 : vector<1x8x8xbf16> to vector<8x8xbf16>
    %cst_14 = arith.constant dense<0.000000e+00> : vector<8x384xf32>
    %9 = tpu.matmul %8, %6, %cst_14 {dimension_numbers = #tpu.dot_dimension_numbers<[1], [0], [0], [1], [0, 0, 1, 1], [], []>} : vector<8x8xbf16>, vector<8x384xbf16>, vector<8x384xf32> -> vector<8x384xf32>
    %10 = arith.addf %4, %9 : vector<8x384xf32>
    %c0_15 = arith.constant 0 : index
    %c0_16 = arith.constant 0 : index
    %c0_17 = arith.constant 0 : index
    %c0_18 = arith.constant 0 : index
    %c2 = arith.constant 2 : index
    %11 = vector.load %arg2[%c0_15, %c0_16, %c0_17, %c0_18, %c2] : memref<1x1x1x8x456xbf16, #tpu.memory_space<vmem>>, vector<1x1x1x8x384xbf16>
    %12 = vector.shape_cast %11 : vector<1x1x1x8x384xbf16> to vector<8x384xbf16>
    %c2_19 = arith.constant 2 : index
    %c0_20 = arith.constant 0 : index
    %c0_21 = arith.constant 0 : index
    %13 = vector.load %arg3[%c2_19, %c0_20, %c0_21] : memref<9x8x8xbf16, #tpu.memory_space<vmem>>, vector<1x8x8xbf16>
    %14 = vector.shape_cast %13 : vector<1x8x8xbf16> to vector<8x8xbf16>
    %cst_22 = arith.constant dense<0.000000e+00> : vector<8x384xf32>
    %15 = tpu.matmul %14, %12, %cst_22 {dimension_numbers = #tpu.dot_dimension_numbers<[1], [0], [0], [1], [0, 0, 1, 1], [], []>} : vector<8x8xbf16>, vector<8x384xbf16>, vector<8x384xf32> -> vector<8x384xf32>
    %16 = arith.addf %10, %15 : vector<8x384xf32>
    %c0_23 = arith.constant 0 : index
    %c0_24 = arith.constant 0 : index
    %c0_25 = arith.constant 0 : index
    %c0_26 = arith.constant 0 : index
    %c24 = arith.constant 24 : index
    %17 = vector.load %arg2[%c0_23, %c0_24, %c0_25, %c0_26, %c24] : memref<1x1x1x8x456xbf16, #tpu.memory_space<vmem>>, vector<1x1x1x8x384xbf16>
    %18 = vector.shape_cast %17 : vector<1x1x1x8x384xbf16> to vector<8x384xbf16>
    %c3 = arith.constant 3 : index
    %c0_27 = arith.constant 0 : index
    %c0_28 = arith.constant 0 : index
    %19 = vector.load %arg3[%c3, %c0_27, %c0_28] : memref<9x8x8xbf16, #tpu.memory_space<vmem>>, vector<1x8x8xbf16>
    %20 = vector.shape_cast %19 : vector<1x8x8xbf16> to vector<8x8xbf16>
    %cst_29 = arith.constant dense<0.000000e+00> : vector<8x384xf32>
    %21 = tpu.matmul %20, %18, %cst_29 {dimension_numbers = #tpu.dot_dimension_numbers<[1], [0], [0], [1], [0, 0, 1, 1], [], []>} : vector<8x8xbf16>, vector<8x384xbf16>, vector<8x384xf32> -> vector<8x384xf32>
    %22 = arith.addf %16, %21 : vector<8x384xf32>
    %c0_30 = arith.constant 0 : index
    %c0_31 = arith.constant 0 : index
    %c0_32 = arith.constant 0 : index
    %c0_33 = arith.constant 0 : index
    %c25 = arith.constant 25 : index
    %23 = vector.load %arg2[%c0_30, %c0_31, %c0_32, %c0_33, %c25] : memref<1x1x1x8x456xbf16, #tpu.memory_space<vmem>>, vector<1x1x1x8x384xbf16>
    %24 = vector.shape_cast %23 : vector<1x1x1x8x384xbf16> to vector<8x384xbf16>
    %c4 = arith.constant 4 : index
    %c0_34 = arith.constant 0 : index
    %c0_35 = arith.constant 0 : index
    %25 = vector.load %arg3[%c4, %c0_34, %c0_35] : memref<9x8x8xbf16, #tpu.memory_space<vmem>>, vector<1x8x8xbf16>
    %26 = vector.shape_cast %25 : vector<1x8x8xbf16> to vector<8x8xbf16>
    %cst_36 = arith.constant dense<0.000000e+00> : vector<8x384xf32>
    %27 = tpu.matmul %26, %24, %cst_36 {dimension_numbers = #tpu.dot_dimension_numbers<[1], [0], [0], [1], [0, 0, 1, 1], [], []>} : vector<8x8xbf16>, vector<8x384xbf16>, vector<8x384xf32> -> vector<8x384xf32>
    %28 = arith.addf %22, %27 : vector<8x384xf32>
    %c0_37 = arith.constant 0 : index
    %c0_38 = arith.constant 0 : index
    %c0_39 = arith.constant 0 : index
    %c0_40 = arith.constant 0 : index
    %c26 = arith.constant 26 : index
    %29 = vector.load %arg2[%c0_37, %c0_38, %c0_39, %c0_40, %c26] : memref<1x1x1x8x456xbf16, #tpu.memory_space<vmem>>, vector<1x1x1x8x384xbf16>
    %30 = vector.shape_cast %29 : vector<1x1x1x8x384xbf16> to vector<8x384xbf16>
    %c5 = arith.constant 5 : index
    %c0_41 = arith.constant 0 : index
    %c0_42 = arith.constant 0 : index
    %31 = vector.load %arg3[%c5, %c0_41, %c0_42] : memref<9x8x8xbf16, #tpu.memory_space<vmem>>, vector<1x8x8xbf16>
    %32 = vector.shape_cast %31 : vector<1x8x8xbf16> to vector<8x8xbf16>
    %cst_43 = arith.constant dense<0.000000e+00> : vector<8x384xf32>
    %33 = tpu.matmul %32, %30, %cst_43 {dimension_numbers = #tpu.dot_dimension_numbers<[1], [0], [0], [1], [0, 0, 1, 1], [], []>} : vector<8x8xbf16>, vector<8x384xbf16>, vector<8x384xf32> -> vector<8x384xf32>
    %34 = arith.addf %28, %33 : vector<8x384xf32>
    %c0_44 = arith.constant 0 : index
    %c0_45 = arith.constant 0 : index
    %c0_46 = arith.constant 0 : index
    %c0_47 = arith.constant 0 : index
    %c48 = arith.constant 48 : index
    %35 = vector.load %arg2[%c0_44, %c0_45, %c0_46, %c0_47, %c48] : memref<1x1x1x8x456xbf16, #tpu.memory_space<vmem>>, vector<1x1x1x8x384xbf16>
    %36 = vector.shape_cast %35 : vector<1x1x1x8x384xbf16> to vector<8x384xbf16>
    %c6 = arith.constant 6 : index
    %c0_48 = arith.constant 0 : index
    %c0_49 = arith.constant 0 : index
    %37 = vector.load %arg3[%c6, %c0_48, %c0_49] : memref<9x8x8xbf16, #tpu.memory_space<vmem>>, vector<1x8x8xbf16>
    %38 = vector.shape_cast %37 : vector<1x8x8xbf16> to vector<8x8xbf16>
    %cst_50 = arith.constant dense<0.000000e+00> : vector<8x384xf32>
    %39 = tpu.matmul %38, %36, %cst_50 {dimension_numbers = #tpu.dot_dimension_numbers<[1], [0], [0], [1], [0, 0, 1, 1], [], []>} : vector<8x8xbf16>, vector<8x384xbf16>, vector<8x384xf32> -> vector<8x384xf32>
    %40 = arith.addf %34, %39 : vector<8x384xf32>
    %c0_51 = arith.constant 0 : index
    %c0_52 = arith.constant 0 : index
    %c0_53 = arith.constant 0 : index
    %c0_54 = arith.constant 0 : index
    %c49 = arith.constant 49 : index
    %41 = vector.load %arg2[%c0_51, %c0_52, %c0_53, %c0_54, %c49] : memref<1x1x1x8x456xbf16, #tpu.memory_space<vmem>>, vector<1x1x1x8x384xbf16>
    %42 = vector.shape_cast %41 : vector<1x1x1x8x384xbf16> to vector<8x384xbf16>
    %c7 = arith.constant 7 : index
    %c0_55 = arith.constant 0 : index
    %c0_56 = arith.constant 0 : index
    %43 = vector.load %arg3[%c7, %c0_55, %c0_56] : memref<9x8x8xbf16, #tpu.memory_space<vmem>>, vector<1x8x8xbf16>
    %44 = vector.shape_cast %43 : vector<1x8x8xbf16> to vector<8x8xbf16>
    %cst_57 = arith.constant dense<0.000000e+00> : vector<8x384xf32>
    %45 = tpu.matmul %44, %42, %cst_57 {dimension_numbers = #tpu.dot_dimension_numbers<[1], [0], [0], [1], [0, 0, 1, 1], [], []>} : vector<8x8xbf16>, vector<8x384xbf16>, vector<8x384xf32> -> vector<8x384xf32>
    %46 = arith.addf %40, %45 : vector<8x384xf32>
    %c0_58 = arith.constant 0 : index
    %c0_59 = arith.constant 0 : index
    %c0_60 = arith.constant 0 : index
    %c0_61 = arith.constant 0 : index
    %c50 = arith.constant 50 : index
    %47 = vector.load %arg2[%c0_58, %c0_59, %c0_60, %c0_61, %c50] : memref<1x1x1x8x456xbf16, #tpu.memory_space<vmem>>, vector<1x1x1x8x384xbf16>
    %48 = vector.shape_cast %47 : vector<1x1x1x8x384xbf16> to vector<8x384xbf16>
    %c8 = arith.constant 8 : index
    %c0_62 = arith.constant 0 : index
    %c0_63 = arith.constant 0 : index
    %49 = vector.load %arg3[%c8, %c0_62, %c0_63] : memref<9x8x8xbf16, #tpu.memory_space<vmem>>, vector<1x8x8xbf16>
    %50 = vector.shape_cast %49 : vector<1x8x8xbf16> to vector<8x8xbf16>
    %cst_64 = arith.constant dense<0.000000e+00> : vector<8x384xf32>
    %51 = tpu.matmul %50, %48, %cst_64 {dimension_numbers = #tpu.dot_dimension_numbers<[1], [0], [0], [1], [0, 0, 1, 1], [], []>} : vector<8x8xbf16>, vector<8x384xbf16>, vector<8x384xf32> -> vector<8x384xf32>
    %52 = arith.addf %46, %51 : vector<8x384xf32>
    %c0_65 = arith.constant 0 : index
    %c0_66 = arith.constant 0 : index
    %53 = vector.load %arg4[%c0_65, %c0_66] : memref<8x1xf32, #tpu.memory_space<vmem>>, vector<8x1xf32>
    %54 = vector.broadcast %53 : vector<8x1xf32> to vector<8x384xf32>
    %55 = arith.addf %52, %54 : vector<8x384xf32>
    %c0_67 = arith.constant 0 : index
    %c0_68 = arith.constant 0 : index
    %c0_69 = arith.constant 0 : index
    %56 = vector.load %arg5[%c0_67, %c0_68, %c0_69] : memref<1x8x384xf32, #tpu.memory_space<vmem>>, vector<1x8x384xf32>
    %57 = vector.shape_cast %56 : vector<1x8x384xf32> to vector<8x384xf32>
    %58 = vector.shape_cast %55 : vector<8x384xf32> to vector<1x8x384xf32>
    tpu.vector_store %arg5[%c0_67, %c0_68, %c0_69], %58 {strides = array<i32>} : memref<1x8x384xf32, #tpu.memory_space<vmem>>, vector<1x8x384xf32>,
    return
  }
  func.func @transform_0(%arg0: i32, %arg1: i32) -> (i32, i32, i32, i32, i32) {
    %c0_i32 = arith.constant 0 : i32
    %c0_i32_0 = arith.constant 0 : i32
    %c0_i32_1 = arith.constant 0 : i32
    %c0_i32_2 = arith.constant 0 : i32
    return %arg0, %arg1, %c0_i32, %c0_i32_0, %c0_i32_1 : i32, i32, i32, i32, i32
  }
  func.func @transform_1(%arg0: i32, %arg1: i32) -> (i32, i32, i32) {
    %c0_i32 = arith.constant 0 : i32
    %c0_i32_0 = arith.constant 0 : i32
    %c0_i32_1 = arith.constant 0 : i32
    %c0_i32_2 = arith.constant 0 : i32
    return %c0_i32, %c0_i32_0, %c0_i32_1 : i32, i32, i32
  }
  func.func @transform_2(%arg0: i32, %arg1: i32) -> (i32, i32) {
    %c0_i32 = arith.constant 0 : i32
    %c0_i32_0 = arith.constant 0 : i32
    %c0_i32_1 = arith.constant 0 : i32
    return %c0_i32, %c0_i32_0 : i32, i32
  }
  func.func @transform_3(%arg0: i32, %arg1: i32) -> (i32, i32, i32) {
    %c0_i32 = arith.constant 0 : i32
    %c0_i32_0 = arith.constant 0 : i32
    return %arg0, %c0_i32, %arg1 : i32, i32, i32
  }
}

</mosaic_0001>

<bundles_post_ra>
// kernel: conv_layer_forward.1
= control target key start
LH: loop header
LB: loop body
LE: loop exit
PB: predicated region body
PF: predicated region fallthrough
CT: control target
= control target key end

     0   :  { %s1520_s12 = smov 0   ;;  %s1522_s13 = smov 0   ;;  %s1685_s0 = inlined_call_operand.vmem [shape: bf16[2,1,1,8,456], index: 0, kind: input, shape index: {}]   ;;  %s1686_s1 = inlined_call_operand.vmem [shape: bf16[9,8,8], index: 1, kind: input, shape index: {}]   ;;  %s1687_s2 = inlined_call_operand.vmem [shape: f32[8,1], index: 2, kind: input, shape index: {}]   ;;  %s1688_s3 = inlined_call_operand.vmem [shape: f32[2,8,384], index: 3, kind: output, shape index: {}]  }
   0x1   :  { %s1524_s14 = smov 0  }
   0x2 LB: > { %s25_s15 = sadd.s32 1, %s1483_s13  ;;  %p1304_p0 = scmp.ge.s32.totalorder %s1487_s14, 1  ;;  %s1487_s14 = sphi %s1524_s14, %s13_s14   ;;  %s1483_s13 = sphi %s1522_s13, %s1690_s13   ;;  %s1479_s12 = sphi %s1520_s12, %s1689_s12  }
   0x3   : > { %p27_p1 = scmp.ge.s32.totalorder %s25_s15, 2  ;;  %p157_p2 = scmp.lt.s32.totalorder %s1487_s14, 3 }
   0x5   : > { %s1692_s15 = smov (%p27_p1, %s25_s15), 0  ;;  %p158_p3 = pnand %p1304_p0, %p157_p2 }
   0x6   : > { %p189_p4 = scmp.lt.s32.totalorder (!%p158_p3), %s1479_s12, 1  ;;  %s1492_s20 = smov (!%p158_p3), 127  }
   0x7   : > { %161 = sbr.rel (%p158_p3) target bundleno = 406 (0x196), region = 32  ;;  %s1493_s21 = smov (!%p158_p3), 126  }
   0x8   : > { %s1494_s22 = smov (!%p158_p3), 104   ;;  %s1495_s23 = smov (!%p158_p3), 103  }
   0x9   : > { %s1496_s24 = smov (!%p158_p3), 102   ;;  %s1497_s25 = smov (!%p158_p3), 80  }
   0xa   : > { %s1498_s26 = smov (!%p158_p3), 79   ;;  %s1499_s27 = smov (!%p158_p3), 78  }
   0xc   : > { %v1489_v0 = vmov 0.0   ;;  %s1694_s12 = smov (!%p189_p4, %s1479_s12), 1  ;;  %v1490_v1 = vmov 0   ;;  %vm1491_vm0 = vmmov 0   ;;  %v1198_v8 = vld [vmem:[%s1687_s2] sm:$0xff]  ;;  %vm233_vm1 = vcmask 1039360  }
   0xd   : > { %1369 = vmatprep.subr.bf16.mxu1 %v1489_v0  ;;  %283 = vmatprep.mubr.bf16.mxu0 %v1490_v1  ;;  %s1350_s16 = sshll.u32 %s1694_s12, 4  ;;  %vm241_vm2 = vcmask 1043456   ;;  %v1308_v19 = vld [vmem:[%s1686_s1 + $0x4] sm:$0xf]  ;;  %vm237_vm3 = vcmask 64512   ;;  %vm438_vm4 = vcmask 1031168  }
   0xe   : > { %1371 = vmatprep.mubr.msk.bf16.mxu1 %vm1491_vm0, %v1489_v0  ;;  %1459 = vset.pattern.permute.xlu0 %v1490_v1  ;;  %s1549_s19 = scalar_lea.vmem %s1685_s0, %s1350_s16  ;;  %v211_v29 = vld [vmem:[%s1686_s1] sm:$0xf]  ;;  %vm548_vm5 = vcmask 850944   ;;  %v1320_v39 = vld [vmem:[%s1686_s1 + $0x8] sm:$0xf]  ;;  %vm658_vm6 = vcmask 842752  }
   0xf   : > { %v212_v2 = vld [vmem:[%s1549_s19 + $0x8] sm:$0xff]  ;;  %v209_v3 = vld [vmem:[%s1549_s19] sm:$0xff]  ;;  %vm768_vm7 = vcmask 834560   ;;  %v1328_v59 = vld [vmem:[%s1686_s1 + $0x10] sm:$0xf]  ;;  %vm878_vm8 = vcmask 654336  }
  0x10   : > { %v1311_v4 = vcombine.low %v212_v2, %v212_v2  ;;  %v1553_v5 = vcombine.low %v209_v3, %v209_v3  ;;  %v1310_v6 = vcombine.high %v209_v3, %v209_v3  ;;  %v1312_v7 = vcombine.high %v212_v2, %v212_v2  ;;  %v1464_v13 = vld [vmem:[%s1549_s19 + $0x8] ss:$0 sps:$4 sm:$0xff]   ;;  %v1324_v49 = vld [vmem:[%s1686_s1 + $0xc] sm:$0xf] }
  0x11   : > { %v345_v22 = vsel %vm241_vm2, %v1464_v13, 0  ;;  %vm988_vm9 = vcmask 646144   ;;  %vm1098_vm10 = vcmask 637952  }
  0x12   : > { %229 = vrot.lane.b32.xlu1 %v1311_v4, %s1492_s20  ;;  %225 = vrot.lane.b32.xlu0 %v1553_v5, %s1492_s20  ;;  %v339_v21 = vsel %vm241_vm2, %v1553_v5, 0 }
  0x16   : > { %231 = vrot.lane.b32.xlu1 %v1312_v7, %s1492_s20  ;;  %227 = vrot.lane.b32.xlu0 %v1310_v6, %s1492_s20 }
  0x1a   : > { %430 = vrot.lane.b32.xlu0 %v1553_v5, %s1493_s21  ;;  %432 = vrot.lane.b32.xlu1 %v1310_v6, %s1493_s21 }
  0x1e   : > { %434 = vrot.lane.b32.xlu0 %v1311_v4, %s1493_s21  ;;  %436 = vrot.lane.b32.xlu1 %v1312_v7, %s1493_s21 }
  0x22   : > { %540 = vrot.lane.b32.xlu0 %v1553_v5, %s1494_s22  ;;  %542 = vrot.lane.b32.xlu1 %v1310_v6, %s1494_s22 }
  0x26   : > { %544 = vrot.lane.b32.xlu0 %v1311_v4, %s1494_s22  ;;  %546 = vrot.lane.b32.xlu1 %v1312_v7, %s1494_s22 }
  0x2a   : > { %650 = vrot.lane.b32.xlu0 %v1553_v5, %s1495_s23  ;;  %652 = vrot.lane.b32.xlu1 %v1310_v6, %s1495_s23 }
  0x2e   : > { %654 = vrot.lane.b32.xlu0 %v1311_v4, %s1495_s23  ;;  %656 = vrot.lane.b32.xlu1 %v1312_v7, %s1495_s23 }
  0x32   : > { %760 = vrot.lane.b32.xlu0 %v1553_v5, %s1496_s24  ;;  %762 = vrot.lane.b32.xlu1 %v1310_v6, %s1496_s24 }
  0x36   : > { %764 = vrot.lane.b32.xlu0 %v1311_v4, %s1496_s24  ;;  %766 = vrot.lane.b32.xlu1 %v1312_v7, %s1496_s24 }
  0x3a   : > { %870 = vrot.lane.b32.xlu0 %v1553_v5, %s1497_s25  ;;  %872 = vrot.lane.b32.xlu1 %v1310_v6, %s1497_s25 }
  0x3e   : > { %874 = vrot.lane.b32.xlu0 %v1311_v4, %s1497_s25  ;;  %876 = vrot.lane.b32.xlu1 %v1312_v7, %s1497_s25  ;;  %s1423_s25 = smul.u32 24, %s1694_s12 }
  0x40   : > { %s206_s28 = scalar_lea.vmem %s1688_s3, %s1423_s25 }
  0x42   : > { %980 = vrot.lane.b32.xlu0 %v1553_v5, %s1498_s26  ;;  %982 = vrot.lane.b32.xlu1 %v1310_v6, %s1498_s26 }
  0x46   : > { %984 = vrot.lane.b32.xlu0 %v1311_v4, %s1498_s26  ;;  %986 = vrot.lane.b32.xlu1 %v1312_v7, %s1498_s26 }
  0x4a   : > { %1090 = vrot.lane.b32.xlu0 %v1553_v5, %s1499_s27  ;;  %1092 = vrot.lane.b32.xlu1 %v1310_v6, %s1499_s27 }
  0x4e   : > { %1094 = vrot.lane.b32.xlu0 %v1311_v4, %s1499_s27  ;;  %1096 = vrot.lane.b32.xlu1 %v1312_v7, %s1499_s27  ;;  %v1332_v7 = vld [vmem:[%s1686_s1 + $0x14] sm:$0xf] }
  0x52   : > { %1201 = vperm.xlu0 %1459, %v1198_v8  }
  0x84   : > { %v230_v9 = vpop.permute.xlu1 %229  ;;  %v226_v10 = vpop.permute.xlu0 %225 }
  0x88   : > { %v232_v11 = vpop.permute.xlu1 %231  ;;  %v228_v12 = vpop.permute.xlu0 %227 }
  0x89   : > { %v235_v14 = vsel %vm233_vm1, %v228_v12, %v230_v9  ;;  %v234_v15 = vsel %vm233_vm1, %v226_v10, %v228_v12  ;;  %v236_v16 = vsel %vm233_vm1, %v230_v9, %v232_v11 }
  0x8a   : > { %1313 = vmatprep.subr.msk.bf16.mxu0 %vm241_vm2, %v235_v14  ;;  %v243_v17 = vsel %vm241_vm2, %v234_v15, 0  ;;  %v249_v18 = vsel %vm241_vm2, %v236_v16, 0 }
  0x8b   : > { %266 = vmatpush1.bf16.msra.mxu0 %v243_v17  ;;  %1370 = vmatpush3.bf16.msra.mxu1 %v249_v18  ;;  %v1336_v17 = vld [vmem:[%s1686_s1 + $0x18] sm:$0xf] }
  0x8c   : > { %v431_v20 = vpop.permute.xlu0 %430  ;;  %1317 = vmatprep.subr.msk.bf16.mxu0 %vm241_vm2, %v1310_v6  ;;  %1375 = vmatprep.subr.bf16.mxu1 %v1489_v0  ;;  %v433_v23 = vpop.permute.xlu1 %432 }
  0x8d   : > { %v439_v26 = vsel %vm438_vm4, %v431_v20, %v433_v23 }
  0x8e   : > { %1314 = vmatmul.mubr.msk.bf16.vlgmr.msra.gmra.mxu0 %vm237_vm3, %v1308_v19  ;;  %1372 = vmatmul.mubr.msk.bf16.vlgmr.msra.gmra.mxu1 %vm237_vm3, %v1308_v19  ;;  %v446_v30 = vsel %vm241_vm2, %v439_v26, 0 }
  0x8f   : > { %362 = vmatpush1.bf16.msra.mxu0 %v339_v21  ;;  %1376 = vmatpush3.bf16.msra.mxu1 %v345_v22 }
  0x90   : > { %v435_v24 = vpop.permute.xlu0 %434  ;;  %v437_v25 = vpop.permute.xlu1 %436  ;;  %379 = vmatprep.mubr.bf16.mxu0 %v1490_v1  ;;  %1377 = vmatprep.mubr.msk.bf16.mxu1 %vm1491_vm0, %v1489_v0 }
  0x91   : > { %v440_v27 = vsel %vm438_vm4, %v433_v23, %v435_v24  ;;  %v441_v28 = vsel %vm438_vm4, %v435_v24, %v437_v25  ;;  %1381 = vmatprep.subr.bf16.mxu1 %v1489_v0 }
  0x92   : > { %1321 = vmatprep.subr.msk.bf16.mxu0 %vm241_vm2, %v440_v27  ;;  %v452_v31 = vsel %vm241_vm2, %v441_v28, 0  ;;  %v1340_v27 = vld [vmem:[%s1686_s1 + $0x1c] sm:$0xf] }
  0x94   : > { %v541_v32 = vpop.permute.xlu0 %540  ;;  %v543_v33 = vpop.permute.xlu1 %542 }
  0x95   : > { %v549_v36 = vsel %vm548_vm5, %v541_v32, %v543_v33 }
  0x96   : > { %1318 = vmatmul.mubr.msk.bf16.vlgmr.msra.gmra.mxu0 %vm237_vm3, %v211_v29  ;;  %1378 = vmatmul.mubr.msk.bf16.vlgmr.msra.gmra.mxu1 %vm237_vm3, %v211_v29  ;;  %v556_v40 = vsel %vm241_vm2, %v549_v36, 0 }
  0x97   : > { %469 = vmatpush1.bf16.msra.mxu0 %v446_v30  ;;  %1382 = vmatpush3.bf16.msra.mxu1 %v452_v31  ;;  %v1344_v30 = vld [vmem:[%s1686_s1 + $0x20] sm:$0xf] }
  0x98   : > { %v545_v34 = vpop.permute.xlu0 %544  ;;  %v547_v35 = vpop.permute.xlu1 %546  ;;  %1383 = vmatprep.mubr.msk.bf16.mxu1 %vm1491_vm0, %v1489_v0  ;;  %486 = vmatprep.mubr.bf16.mxu0 %v1490_v1 }
  0x99   : > { %v550_v37 = vsel %vm548_vm5, %v543_v33, %v545_v34  ;;  %v551_v38 = vsel %vm548_vm5, %v545_v34, %v547_v35  ;;  %1387 = vmatprep.subr.bf16.mxu1 %v1489_v0 }
  0x9a   : > { %1325 = vmatprep.subr.msk.bf16.mxu0 %vm241_vm2, %v550_v37  ;;  %v562_v41 = vsel %vm241_vm2, %v551_v38, 0 }
  0x9c   : > { %v651_v42 = vpop.permute.xlu0 %650  ;;  %v653_v43 = vpop.permute.xlu1 %652 }
  0x9d   : > { %v659_v46 = vsel %vm658_vm6, %v651_v42, %v653_v43 }
  0x9e   : > { %1322 = vmatmul.mubr.msk.bf16.vlgmr.msra.gmra.mxu0 %vm237_vm3, %v1320_v39  ;;  %1384 = vmatmul.mubr.msk.bf16.vlgmr.msra.gmra.mxu1 %vm237_vm3, %v1320_v39  ;;  %v666_v50 = vsel %vm241_vm2, %v659_v46, 0 }
  0x9f   : > { %579 = vmatpush1.bf16.msra.mxu0 %v556_v40  ;;  %1388 = vmatpush3.bf16.msra.mxu1 %v562_v41 }
  0xa0   : > { %v655_v44 = vpop.permute.xlu0 %654  ;;  %v657_v45 = vpop.permute.xlu1 %656  ;;  %1389 = vmatprep.mubr.msk.bf16.mxu1 %vm1491_vm0, %v1489_v0  ;;  %596 = vmatprep.mubr.bf16.mxu0 %v1490_v1 }
  0xa1   : > { %v660_v47 = vsel %vm658_vm6, %v653_v43, %v655_v44  ;;  %v661_v48 = vsel %vm658_vm6, %v655_v44, %v657_v45  ;;  %1393 = vmatprep.subr.bf16.mxu1 %v1489_v0 }
  0xa2   : > { %1329 = vmatprep.subr.msk.bf16.mxu0 %vm241_vm2, %v660_v47  ;;  %v672_v51 = vsel %vm241_vm2, %v661_v48, 0 }
  0xa4   : > { %v761_v52 = vpop.permute.xlu0 %760  ;;  %v763_v53 = vpop.permute.xlu1 %762 }
  0xa5   : > { %v769_v56 = vsel %vm768_vm7, %v761_v52, %v763_v53 }
  0xa6   : > { %1326 = vmatmul.mubr.msk.bf16.vlgmr.msra.gmra.mxu0 %vm237_vm3, %v1324_v49  ;;  %1390 = vmatmul.mubr.msk.bf16.vlgmr.msra.gmra.mxu1 %vm237_vm3, %v1324_v49  ;;  %v776_v60 = vsel %vm241_vm2, %v769_v56, 0 }
  0xa7   : > { %689 = vmatpush1.bf16.msra.mxu0 %v666_v50  ;;  %1394 = vmatpush3.bf16.msra.mxu1 %v672_v51 }
  0xa8   : > { %v765_v54 = vpop.permute.xlu0 %764  ;;  %v767_v55 = vpop.permute.xlu1 %766  ;;  %1395 = vmatprep.mubr.msk.bf16.mxu1 %vm1491_vm0, %v1489_v0  ;;  %706 = vmatprep.mubr.bf16.mxu0 %v1490_v1 }
  0xa9   : > { %v770_v57 = vsel %vm768_vm7, %v763_v53, %v765_v54  ;;  %v771_v58 = vsel %vm768_vm7, %v765_v54, %v767_v55  ;;  %1399 = vmatprep.subr.bf16.mxu1 %v1489_v0 }
  0xaa   : > { %1333 = vmatprep.subr.msk.bf16.mxu0 %vm241_vm2, %v770_v57  ;;  %v782_v61 = vsel %vm241_vm2, %v771_v58, 0 }
  0xac   : > { %v871_v62 = vpop.permute.xlu0 %870  ;;  %v873_v63 = vpop.permute.xlu1 %872 }
  0xad   : > { %v879_v4 = vsel %vm878_vm8, %v871_v62, %v873_v63 }
  0xae   : > { %1330 = vmatmul.mubr.msk.bf16.vlgmr.msra.gmra.mxu0 %vm237_vm3, %v1328_v59  ;;  %1396 = vmatmul.mubr.msk.bf16.vlgmr.msra.gmra.mxu1 %vm237_vm3, %v1328_v59  ;;  %v886_v8 = vsel %vm241_vm2, %v879_v4, 0 }
  0xaf   : > { %799 = vmatpush1.bf16.msra.mxu0 %v776_v60  ;;  %1400 = vmatpush3.bf16.msra.mxu1 %v782_v61 }
  0xb0   : > { %v875_v2 = vpop.permute.xlu0 %874  ;;  %v877_v3 = vpop.permute.xlu1 %876  ;;  %1401 = vmatprep.mubr.msk.bf16.mxu1 %vm1491_vm0, %v1489_v0  ;;  %816 = vmatprep.mubr.bf16.mxu0 %v1490_v1 }
  0xb1   : > { %v880_v5 = vsel %vm878_vm8, %v873_v63, %v875_v2  ;;  %v881_v6 = vsel %vm878_vm8, %v875_v2, %v877_v3  ;;  %1405 = vmatprep.subr.bf16.mxu1 %v1489_v0 }
  0xb2   : > { %1337 = vmatprep.subr.msk.bf16.mxu0 %vm241_vm2, %v880_v5  ;;  %v892_v9 = vsel %vm241_vm2, %v881_v6, 0 }
  0xb4   : > { %v981_v10 = vpop.permute.xlu0 %980  ;;  %v983_v11 = vpop.permute.xlu1 %982 }
  0xb5   : > { %v989_v14 = vsel %vm988_vm9, %v981_v10, %v983_v11 }
  0xb6   : > { %1334 = vmatmul.mubr.msk.bf16.vlgmr.msra.gmra.mxu0 %vm237_vm3, %v1332_v7  ;;  %1402 = vmatmul.mubr.msk.bf16.vlgmr.msra.gmra.mxu1 %vm237_vm3, %v1332_v7  ;;  %v996_v18 = vsel %vm241_vm2, %v989_v14, 0 }
  0xb7   : > { %909 = vmatpush1.bf16.msra.mxu0 %v886_v8  ;;  %1406 = vmatpush3.bf16.msra.mxu1 %v892_v9 }
  0xb8   : > { %v985_v12 = vpop.permute.xlu0 %984  ;;  %v987_v13 = vpop.permute.xlu1 %986  ;;  %1407 = vmatprep.mubr.msk.bf16.mxu1 %vm1491_vm0, %v1489_v0  ;;  %926 = vmatprep.mubr.bf16.mxu0 %v1490_v1 }
  0xb9   : > { %v990_v15 = vsel %vm988_vm9, %v983_v11, %v985_v12  ;;  %v991_v16 = vsel %vm988_vm9, %v985_v12, %v987_v13  ;;  %1411 = vmatprep.subr.bf16.mxu1 %v1489_v0 }
  0xba   : > { %1341 = vmatprep.subr.msk.bf16.mxu0 %vm241_vm2, %v990_v15  ;;  %v1002_v19 = vsel %vm241_vm2, %v991_v16, 0 }
  0xbc   : > { %v1091_v20 = vpop.permute.xlu0 %1090  ;;  %v1093_v21 = vpop.permute.xlu1 %1092 }
  0xbd   : > { %v1099_v24 = vsel %vm1098_vm10, %v1091_v20, %v1093_v21 }
  0xbe   : > { %1338 = vmatmul.mubr.msk.bf16.vlgmr.msra.gmra.mxu0 %vm237_vm3, %v1336_v17  ;;  %1408 = vmatmul.mubr.msk.bf16.vlgmr.msra.gmra.mxu1 %vm237_vm3, %v1336_v17  ;;  %v1106_v28 = vsel %vm241_vm2, %v1099_v24, 0 }
  0xbf   : > { %1019 = vmatpush1.bf16.msra.mxu0 %v996_v18  ;;  %1412 = vmatpush3.bf16.msra.mxu1 %v1002_v19 }
  0xc0   : > { %v1095_v22 = vpop.permute.xlu0 %1094  ;;  %v1097_v23 = vpop.permute.xlu1 %1096  ;;  %1036 = vmatprep.mubr.bf16.mxu0 %v1490_v1  ;;  %1413 = vmatprep.mubr.msk.bf16.mxu1 %vm1491_vm0, %v1489_v0 }
  0xc1   : > { %v1100_v25 = vsel %vm1098_vm10, %v1093_v21, %v1095_v22  ;;  %v1101_v26 = vsel %vm1098_vm10, %v1095_v22, %v1097_v23  ;;  %1417 = vmatprep.subr.bf16.mxu1 %v1489_v0 }
  0xc2   : > { %1345 = vmatprep.subr.msk.bf16.mxu0 %vm241_vm2, %v1100_v25  ;;  %v1112_v29 = vsel %vm241_vm2, %v1101_v26, 0 }
  0xc6   : > { %1342 = vmatmul.mubr.msk.bf16.vlgmr.msra.gmra.mxu0 %vm237_vm3, %v1340_v27  ;;  %1414 = vmatmul.mubr.msk.bf16.vlgmr.msra.gmra.mxu1 %vm237_vm3, %v1340_v27 }
  0xc7   : > { %1129 = vmatpush1.bf16.msra.mxu0 %v1106_v28  ;;  %1418 = vmatpush3.bf16.msra.mxu1 %v1112_v29 }
  0xc8   : > { %1146 = vmatprep.mubr.bf16.mxu0 %v1490_v1  ;;  %1419 = vmatprep.mubr.msk.bf16.mxu1 %vm1491_vm0, %v1489_v0 }
  0xce   : > { %1346 = vmatmul.mubr.msk.bf16.vlgmr.msra.gmra.mxu0 %vm237_vm3, %v1344_v30  ;;  %1420 = vmatmul.mubr.msk.bf16.vlgmr.msra.gmra.mxu1 %vm237_vm3, %v1344_v30 }
 0x14e   : > { %v285_v31 = vpop.f32.mrf.mxu0  ;;  %v326_v32 = vpop.f32.mrf.mxu1 }
 0x150   : > { %v287_v33 = vpop.f32.mrf.mxu0  ;;  %v1373_v34 = vpop.f32.mrf.mxu1 }
 0x152   : > { %v289_v35 = vpop.f32.mrf.mxu0  ;;  %v329_v36 = vpop.f32.mrf.mxu1 }
 0x154   : > { %v290_v37 = vpop.f32.mrf.mxu0  ;;  %v1374_v38 = vpop.f32.mrf.mxu1 }
 0x156   : > { %v381_v1 = vpop.f32.mrf.mxu0  ;;  %v422_v39 = vpop.f32.mrf.mxu1 }
 0x157   : > { %v382_v19 = vadd.f32 %v381_v1, %v285_v31  ;;  %v423_v20 = vadd.f32 %v422_v39, %v326_v32 }
 0x158   : > { %v383_v40 = vpop.f32.mrf.mxu0  ;;  %v1379_v0 = vpop.f32.mrf.mxu1 }
 0x159   : > { %v384_v23 = vadd.f32 %v383_v40, %v287_v33 }
 0x15a   : > { %v385_v41 = vpop.f32.mrf.mxu0  ;;  %v425_v42 = vpop.f32.mrf.mxu1 }
 0x15c   : > { %v386_v43 = vpop.f32.mrf.mxu0  ;;  %v1380_v44 = vpop.f32.mrf.mxu1 }
 0x15e   : > { %v488_v45 = vpop.f32.mrf.mxu0  ;;  %v529_v46 = vpop.f32.mrf.mxu1 }
 0x15f   : > { %v535_v24 = vadd.f32 %v488_v45, %v382_v19  ;;  %v537_v25 = vadd.f32 %v529_v46, %v423_v20 }
 0x160   : > { %v490_v47 = vpop.f32.mrf.mxu0  ;;  %v1385_v48 = vpop.f32.mrf.mxu1 }
 0x161   : > { %v536_v28 = vadd.f32 %v490_v47, %v384_v23 }
 0x162   : > { %v492_v49 = vpop.f32.mrf.mxu0  ;;  %v532_v50 = vpop.f32.mrf.mxu1 }
 0x163   : > { %v1202_v49 = vpop.permute.xlu0 %1201 }
 0x164   : > { %v493_v51 = vpop.f32.mrf.mxu0  ;;  %v1386_v52 = vpop.f32.mrf.mxu1 }
 0x166   : > { %v598_v53 = vpop.f32.mrf.mxu0  ;;  %v639_v54 = vpop.f32.mrf.mxu1 }
 0x167   : > { %v645_v29 = vadd.f32 %v598_v53, %v535_v24  ;;  %v647_v30 = vadd.f32 %v639_v54, %v537_v25 }
 0x168   : > { %v600_v55 = vpop.f32.mrf.mxu0  ;;  %v1391_v56 = vpop.f32.mrf.mxu1 }
 0x169   : > { %v646_v36 = vadd.f32 %v600_v55, %v536_v28 }
 0x16a   : > { %v602_v57 = vpop.f32.mrf.mxu0  ;;  %v642_v58 = vpop.f32.mrf.mxu1 }
 0x16c   : > { %v603_v59 = vpop.f32.mrf.mxu0  ;;  %v1392_v60 = vpop.f32.mrf.mxu1 }
 0x16e   : > { %v708_v61 = vpop.f32.mrf.mxu0  ;;  %v749_v62 = vpop.f32.mrf.mxu1 }
 0x16f   : > { %v755_v37 = vadd.f32 %v708_v61, %v645_v29  ;;  %v757_v38 = vadd.f32 %v749_v62, %v647_v30 }
 0x170   : > { %v710_v63 = vpop.f32.mrf.mxu0  ;;  %v1397_v2 = vpop.f32.mrf.mxu1 }
 0x171   : > { %v756_v31 = vadd.f32 %v710_v63, %v646_v36 }
 0x172   : > { %v712_v3 = vpop.f32.mrf.mxu0  ;;  %v752_v4 = vpop.f32.mrf.mxu1 }
 0x174   : > { %v713_v5 = vpop.f32.mrf.mxu0  ;;  %v1398_v6 = vpop.f32.mrf.mxu1 }
 0x176   : > { %v818_v7 = vpop.f32.mrf.mxu0  ;;  %v859_v8 = vpop.f32.mrf.mxu1 }
 0x177   : > { %v865_v32 = vadd.f32 %v818_v7, %v755_v37  ;;  %v867_v1 = vadd.f32 %v859_v8, %v757_v38 }
 0x178   : > { %v820_v9 = vpop.f32.mrf.mxu0  ;;  %v1403_v10 = vpop.f32.mrf.mxu1 }
 0x179   : > { %v866_v40 = vadd.f32 %v820_v9, %v756_v31 }
 0x17a   : > { %v822_v11 = vpop.f32.mrf.mxu0  ;;  %v862_v12 = vpop.f32.mrf.mxu1 }
 0x17c   : > { %v823_v13 = vpop.f32.mrf.mxu0  ;;  %v1404_v14 = vpop.f32.mrf.mxu1 }
 0x17e   : > { %v928_v15 = vpop.f32.mrf.mxu0  ;;  %v969_v16 = vpop.f32.mrf.mxu1 }
 0x17f   : > { %v975_v42 = vadd.f32 %v928_v15, %v865_v32  ;;  %v977_v43 = vadd.f32 %v969_v16, %v867_v1 }
 0x180   : > { %v930_v17 = vpop.f32.mrf.mxu0  ;;  %v1409_v18 = vpop.f32.mrf.mxu1 }
 0x181   : > { %v976_v46 = vadd.f32 %v930_v17, %v866_v40 }
 0x182   : > { %v932_v21 = vpop.f32.mrf.mxu0  ;;  %v972_v22 = vpop.f32.mrf.mxu1 }
 0x184   : > { %v933_v26 = vpop.f32.mrf.mxu0  ;;  %v1410_v27 = vpop.f32.mrf.mxu1 }
 0x186   : > { %v1038_v34 = vpop.f32.mrf.mxu0  ;;  %v1079_v35 = vpop.f32.mrf.mxu1 }
 0x187   : > { %v1085_v47 = vadd.f32 %v1038_v34, %v975_v42  ;;  %v1087_v48 = vadd.f32 %v1079_v35, %v977_v43 }
 0x188   : > { %v1040_v0 = vpop.f32.mrf.mxu0  ;;  %v1415_v41 = vpop.f32.mrf.mxu1 }
 0x189   : > { %v1086_v52 = vadd.f32 %v1040_v0, %v976_v46 }
 0x18a   : > { %v1042_v39 = vpop.f32.mrf.mxu0  ;;  %v1082_v33 = vpop.f32.mrf.mxu1 }
 0x18c   : > { %v1043_v44 = vpop.f32.mrf.mxu0  ;;  %v1416_v45 = vpop.f32.mrf.mxu1 }
 0x18e   : > { %v1148_v50 = vpop.f32.mrf.mxu0  ;;  %v1189_v51 = vpop.f32.mrf.mxu1 }
 0x18f   : > { %v1195_v53 = vadd.f32 %v1148_v50, %v1085_v47  ;;  %v1197_v54 = vadd.f32 %v1189_v51, %v1087_v48 }
 0x190   : > { %v1421_v55 = vpop.f32.mrf.mxu1  ;;  %v1150_v56 = vpop.f32.mrf.mxu0 }
 0x191   : > { %v1204_v57 = vadd.f32 %v1202_v49, %v1195_v53  ;;  %v1206_v58 = vadd.f32 %v1202_v49, %v1197_v54  ;;  %v1196_v59 = vadd.f32 %v1150_v56, %v1086_v52 }
 0x192   : > { %v1152_v60 = vpop.f32.mrf.mxu0  ;;  %v1192_v61 = vpop.f32.mrf.mxu1 }
 0x193   : > { %1207 = vst [vmem:[%s206_s28] sm:$0xff] %v1204_v57  ;;  %1209 = vst [vmem:[%s206_s28 + $0x10] sm:$0xff] %v1206_v58  ;;  %v1205_v62 = vadd.f32 %v1202_v49, %v1196_v59 }
 0x194   : > { %v1153_v63 = vpop.f32.mrf.mxu0  ;;  %v1422_v2 = vpop.f32.mrf.mxu1 }
 0x195   : > { %1208 = vst [vmem:[%s206_s28 + $0x8] sm:$0xff] %v1205_v62 }
 0x196 PF: > { %s13_s14 = sadd.s32 1, %s1487_s14   ;;  %s1689_s12 = smov %s1483_s13 }
 0x197   : > { %p10_p5 = scmp.ge.s32.totalorder %s13_s14, 4   ;;  %s1690_s13 = smov %s1692_s15 }
 0x199   :  { %12 = sbr.rel (!%p10_p5) target bundleno = 2 (0x2), region = 70 }

</bundles_post_ra>
